<compile_context>
chip_gen: v7x
topology: tpu7x:2x2x1
jax: 0.10.0
libtpu: 0.0.40
codegen_flags: <defaults>
</compile_context>

<pallas_src>
import jax
import jax.numpy as jnp
from jax.experimental import pallas as pl
from jax.experimental.pallas import tpu as pltpu


def _round_up(x, m):
    return (x + m - 1) // m * m


def _cdiv(a, b):
    return -(-a // b)


def _vmem_capacity_bytes():
    try:
        return int(pltpu.get_tpu_info().vmem_capacity_bytes)
    except Exception:
        return 64 << 20  # v7x worst case -> safe fallback on every generation


def _num_tensorcores():
    try:
        kind = jax.devices()[0].device_kind.lower()
    except Exception:
        return 1
    return 2 if "v7" in kind else 1  # v7x: 2 TCs/chip; v5e/v6e: 1


# --------------------------------- kernels ----------------------------------

def _layer1_kernel(x_ref, w1_ref, b1_ref, o_ref, acc_ref):
    """h1 = relu(x @ w1 + b1); w1 streamed over K, N split across TCs."""
    k = pl.program_id(2)

    @pl.when(k == 0)
    def _():
        acc_ref[...] = jnp.zeros_like(acc_ref)

    # bf16 operands, f32 accumulation on the MXU.
    acc_ref[...] += jnp.dot(x_ref[...], w1_ref[...],
                            preferred_element_type=jnp.float32)

    @pl.when(k == pl.num_programs(2) - 1)
    def _():
        o_ref[...] = jnp.maximum(acc_ref[...] + b1_ref[...], 0.0)


def _head_kernel(h1_ref, w2_ref, b2_ref, w3_ref, b3_ref, o_ref):
    """out = tanh(relu(h1 @ w2 + b2) @ w3 + b3), lane-dense output block."""
    h2 = jnp.dot(h1_ref[...], w2_ref[...],
                 preferred_element_type=jnp.float32) + b2_ref[...]
    h2 = jnp.maximum(h2, 0.0)
    # Degenerate N=1 matmul -> VPU multiply + XLU lane reduction (MXU idle).
    h3 = jnp.sum(h2 * w3_ref[...], axis=-1, keepdims=True) + b3_ref[...]
    o_ref[...] = jnp.broadcast_to(jnp.tanh(h3), o_ref.shape)


# --------------------------------- wrapper -----------------------------------

def make_steering_angle_predictor(params, *, tk=None, num_n=None):
    """One-time weight prep; returns a jitted forward(x) -> (B,) callable."""
    w1, b1, w2, b2, w3, b3 = params
    d_in, n1 = w1.shape
    assert n1 == 512 and w2.shape == (512, 128) and w3.shape == (128, 1)

    # ---- static tiling decisions (depend only on the weights) ----
    d128 = _round_up(d_in, 128)
    if tk is None:
        nk = _cdiv(d128, 8192)                 # big K tiles: per-step overhead
        tk = _round_up(_cdiv(d128, nk), 128)   # (~0.35us) amortized, padding
    else:                                      # waste kept < 128*num_k
        tk = _round_up(tk, 128)
    d_in_pad = _round_up(d128, tk)
    num_k = d_in_pad // tk

    if num_n is None:
        num_n = _num_tensorcores()             # 2 on v7x: each TC streams half of w1
    assert 512 % num_n == 0
    tn = 512 // num_n

    # ---- one-time weight prep (hoisted out of the per-call path) ----
    w1_p = jnp.pad(w1.astype(jnp.bfloat16), ((0, d_in_pad - d_in), (0, 0)))
    b1_r = jnp.asarray(b1, jnp.float32).reshape(1, 512)
    w2_f = jnp.asarray(w2, jnp.float32)
    b2_r = jnp.asarray(b2, jnp.float32).reshape(1, 128)
    w3_r = jnp.asarray(w3, jnp.float32).reshape(1, 128)
    b3_r = jnp.asarray(b3, jnp.float32).reshape(1, 1)

    vmem_ceiling = (_vmem_capacity_bytes() * 3) // 4   # ~48MiB v7x, ~96MiB v5e/v6e

    @jax.jit
    def forward(x, w1_p, b1_r, w2_f, b2_r, w3_r, b3_r):
        B = x.shape[0]
        # Glue: drop first token + flatten (row-major, same as torch.flatten).
        x_flat = x[:, 1:, :].reshape(B, -1).astype(jnp.bfloat16)
        assert x_flat.shape[1] == d_in

        # Batch tiling keeps x tiles / accumulators bounded on v7x and adds a
        # second parallel axis for large B.
        b16 = _round_up(max(B, 1), 16)
        num_b = _cdiv(b16, 256)
        tb = _round_up(_cdiv(b16, num_b), 16)
        b_pad = num_b * tb

        x_p = jnp.pad(x_flat, ((0, b_pad - B), (0, d_in_pad - d_in)))

        # ---------------- kernel 1: h1 = relu(x @ w1 + b1) ----------------
        vmem1 = (2 * tb * tk * 2        # x tiles (bf16, double-buffered)
                 + 2 * tk * tn * 2      # w1 tiles (bf16, double-buffered)
                 + 2 * tb * tn * 4      # output blocks
                 + tb * tn * 4          # f32 accumulator
                 + 8 * tn * 4)          # b1 (sublane-padded)
        vmem1 = min(int(vmem1 * 1.25) + (4 << 20), vmem_ceiling)
        cost1 = pl.CostEstimate(
            flops=2 * b_pad * d_in_pad * 512,
            transcendentals=0,
            bytes_accessed=(num_n * x_p.size * 2 + w1_p.size * 2
                            + b_pad * 512 * 4 + 512 * 4),
        )
        h1 = pl.pallas_call(
            _layer1_kernel,
            out_shape=jax.ShapeDtypeStruct((b_pad, 512), jnp.float32),
            grid_spec=pltpu.PrefetchScalarGridSpec(
                num_scalar_prefetch=0,
                grid=(num_b, num_n, num_k),
                in_specs=[
                    pl.BlockSpec((tb, tk), lambda b, n, k: (b, k)),  # x
                    pl.BlockSpec((tk, tn), lambda b, n, k: (k, n)),  # w1 (streamed)
                    pl.BlockSpec((1, tn), lambda b, n, k: (0, n)),   # b1
                ],
                out_specs=pl.BlockSpec((tb, tn), lambda b, n, k: (b, n)),
                scratch_shapes=[pltpu.VMEM((tb, tn), jnp.float32)],
            ),
            compiler_params=pltpu.CompilerParams(
                dimension_semantics=("parallel", "parallel", "arbitrary"),
                vmem_limit_bytes=vmem1,
            ),
            cost_estimate=cost1,
        )(x_p, w1_p, b1_r)

        # ------------- kernel 2: tiny layer-2/3 + tanh head -------------
        vmem2 = (2 * tb * 512 * 4 + 512 * 128 * 4 + 2 * tb * 128 * 4
                 + 4 * 8 * 128 * 4)
        vmem2 = min(int(vmem2 * 1.25) + (4 << 20), vmem_ceiling)
        cost2 = pl.CostEstimate(
            flops=2 * b_pad * (512 * 128 + 128),
            transcendentals=b_pad,
            bytes_accessed=(b_pad * 512 * 4 + 512 * 128 * 4 + b_pad * 128 * 4),
        )
        out = pl.pallas_call(
            _head_kernel,
            out_shape=jax.ShapeDtypeStruct((b_pad, 128), jnp.float32),
            grid_spec=pltpu.PrefetchScalarGridSpec(
                num_scalar_prefetch=0,
                grid=(num_b,),
                in_specs=[
                    pl.BlockSpec((tb, 512), lambda b: (b, 0)),    # h1
                    pl.BlockSpec((512, 128), lambda b: (0, 0)),   # w2
                    pl.BlockSpec((1, 128), lambda b: (0, 0)),     # b2
                    pl.BlockSpec((1, 128), lambda b: (0, 0)),     # w3 row
                    pl.BlockSpec((1, 1), lambda b: (0, 0)),       # b3
                ],
                out_specs=pl.BlockSpec((tb, 128), lambda b: (b, 0)),
            ),
            compiler_params=pltpu.CompilerParams(
                dimension_semantics=("parallel",),
                vmem_limit_bytes=vmem2,
            ),
            cost_estimate=cost2,
        )(h1, w2_f, b2_r, w3_r, b3_r)

        return out[:B, 0]                                  # (B,)

    def apply(x):
        return forward(x, w1_p, b1_r, w2_f, b2_r, w3_r, b3_r)

    return apply


# ------------------------------ test harness ---------------------------------

def init_params(key, num_patches, feature_dim):
    """Deterministic synthetic parameters (shapes match the nn.Module)."""
    d_in = num_patches * feature_dim
    k1, k2, k3 = jax.random.split(key, 3)

    def lin(k, fan_in, fan_out):
        bound = 1.0 / jnp.sqrt(jnp.float32(fan_in))
        kw, kb = jax.random.split(k)
        w = jax.random.uniform(kw, (fan_in, fan_out), jnp.float32, -bound, bound)
        b = jax.random.uniform(kb, (1, fan_out), jnp.float32, -bound, bound)
        return w, b

    w1, b1 = lin(k1, d_in, 512)
    w2, b2 = lin(k2, 512, 128)
    w3, b3 = lin(k3, 128, 1)
    return (w1, b1, w2, b2, w3, b3)


def reference(x, params):
    """Pure-JAX f32 reference (faithful to the PyTorch module)."""
    w1, b1, w2, b2, w3, b3 = params
    B = x.shape[0]
    h = x[:, 1:, :].reshape(B, -1).astype(jnp.float32)
    h = jnp.maximum(h @ w1 + b1, 0.0)
    h = jnp.maximum(h @ w2 + b2, 0.0)
    h = jnp.tanh(h @ w3 + b3)
    return h[:, 0]


if __name__ == "__main__":
    batch = 2
    feature_dim = 32
    num_patches = 8

    key = jax.random.PRNGKey(0)
    kx, kp = jax.random.split(key)
    # Input carries num_patches + 1 tokens (e.g. CLS + patches).
    x = jax.random.normal(kx, (batch, num_patches + 1, feature_dim), jnp.float32)
    params = init_params(kp, num_patches, feature_dim)

    # tk=128 forces 2 K-tiles and num_n=2 forces the N-split so the streaming
    # accumulator + parallel-N path is exercised even at demo sizes; production
    # sizes use the auto tile (tk<=8192) and chip-detected num_n.
    predictor = make_steering_angle_predictor(params, tk=128, num_n=2)
    out = jax.block_until_ready(predictor(x))

    ref = reference(x, params)
    assert out.shape == (batch,)
    # Layer-1 runs in bf16 (f32 accumulation) -> relaxed tolerance vs f32 ref.
    assert jnp.allclose(out, ref, atol=1e-2, rtol=1e-2), (out, ref)
    print("KERNEL_OK")
</pallas_src>

<mosaic_0001>
module attributes {stable_mosaic.version = 11 : i64} {
  func.func @_layer1_kernel(%arg0: i32, %arg1: i32, %arg2: i32, %arg3: memref<16x128xbf16, #tpu.memory_space<vmem>>, %arg4: memref<128x256xbf16, #tpu.memory_space<vmem>>, %arg5: memref<1x256xf32, #tpu.memory_space<vmem>>, %arg6: memref<16x256xf32, #tpu.memory_space<vmem>>, %arg7: memref<16x256xf32, #tpu.memory_space<vmem>>) attributes {dimension_semantics = [#tpu.dimension_semantics<parallel>, #tpu.dimension_semantics<parallel>, #tpu.dimension_semantics<arbitrary>], iteration_bounds = array<i64: 1, 2, 2>, scalar_prefetch = 0 : i64, scratch_operands = 1 : i64, tpu.core_type = #tpu.core_type<tc>, window_params = [{transform_indices = @transform_0, window_bounds = array<i64: 16, 128>}, {transform_indices = @transform_1, window_bounds = array<i64: 128, 256>}, {transform_indices = @transform_2, window_bounds = array<i64: 1, 256>}, {transform_indices = @transform_3, window_bounds = array<i64: 16, 256>}]} {
    %c0_i32 = arith.constant 0 : i32
    %0 = arith.cmpi eq, %arg2, %c0_i32 : i32
    %1 = arith.extui %0 : i1 to i32
    %c0_i32_0 = arith.constant 0 : i32
    %2 = arith.cmpi ne, %1, %c0_i32_0 : i32
    scf.if %2 {
      %cst_9 = arith.constant 0.000000e+00 : f32
      %12 = vector.broadcast %cst_9 : f32 to vector<16x256xf32>
      %c0_10 = arith.constant 0 : index
      %c0_11 = arith.constant 0 : index
      %13 = vector.load %arg7[%c0_10, %c0_11] : memref<16x256xf32, #tpu.memory_space<vmem>>, vector<16x256xf32>
      tpu.vector_store %arg7[%c0_10, %c0_11], %12 {strides = array<i32>} : memref<16x256xf32, #tpu.memory_space<vmem>>, vector<16x256xf32>,
    } else {
    }
    %c0 = arith.constant 0 : index
    %c0_1 = arith.constant 0 : index
    %3 = vector.load %arg7[%c0, %c0_1] : memref<16x256xf32, #tpu.memory_space<vmem>>, vector<16x256xf32>
    %c0_2 = arith.constant 0 : index
    %c0_3 = arith.constant 0 : index
    %4 = vector.load %arg3[%c0_2, %c0_3] : memref<16x128xbf16, #tpu.memory_space<vmem>>, vector<16x128xbf16>
    %c0_4 = arith.constant 0 : index
    %c0_5 = arith.constant 0 : index
    %5 = vector.load %arg4[%c0_4, %c0_5] : memref<128x256xbf16, #tpu.memory_space<vmem>>, vector<128x256xbf16>
    %cst = arith.constant dense<0.000000e+00> : vector<16x256xf32>
    %6 = tpu.matmul %4, %5, %cst {dimension_numbers = #tpu.dot_dimension_numbers<[1], [0], [0], [1], [0, 0, 1, 1], [], []>} : vector<16x128xbf16>, vector<128x256xbf16>, vector<16x256xf32> -> vector<16x256xf32>
    %7 = arith.addf %3, %6 : vector<16x256xf32>
    %c0_6 = arith.constant 0 : index
    %c0_7 = arith.constant 0 : index
    %8 = vector.load %arg7[%c0_6, %c0_7] : memref<16x256xf32, #tpu.memory_space<vmem>>, vector<16x256xf32>
    tpu.vector_store %arg7[%c0_6, %c0_7], %7 {strides = array<i32>} : memref<16x256xf32, #tpu.memory_space<vmem>>, vector<16x256xf32>,
    %c1_i32 = arith.constant 1 : i32
    %9 = arith.cmpi eq, %arg2, %c1_i32 : i32
    %10 = arith.extui %9 : i1 to i32
    %c0_i32_8 = arith.constant 0 : i32
    %11 = arith.cmpi ne, %10, %c0_i32_8 : i32
    scf.if %11 {
      %c0_9 = arith.constant 0 : index
      %c0_10 = arith.constant 0 : index
      %12 = vector.load %arg7[%c0_9, %c0_10] : memref<16x256xf32, #tpu.memory_space<vmem>>, vector<16x256xf32>
      %c0_11 = arith.constant 0 : index
      %c0_12 = arith.constant 0 : index
      %13 = vector.load %arg5[%c0_11, %c0_12] : memref<1x256xf32, #tpu.memory_space<vmem>>, vector<1x256xf32>
      %14 = vector.broadcast %13 : vector<1x256xf32> to vector<16x256xf32>
      %15 = arith.addf %12, %14 : vector<16x256xf32>
      %cst_13 = arith.constant 0.000000e+00 : f32
      %16 = vector.broadcast %cst_13 : f32 to vector<16x256xf32>
      %17 = arith.maximumf %15, %16 : vector<16x256xf32>
      %c0_14 = arith.constant 0 : index
      %c0_15 = arith.constant 0 : index
      %18 = vector.load %arg6[%c0_14, %c0_15] : memref<16x256xf32, #tpu.memory_space<vmem>>, vector<16x256xf32>
      tpu.vector_store %arg6[%c0_14, %c0_15], %17 {strides = array<i32>} : memref<16x256xf32, #tpu.memory_space<vmem>>, vector<16x256xf32>,
    } else {
    }
    return
  }
  func.func @transform_0(%arg0: i32, %arg1: i32, %arg2: i32) -> (i32, i32) {
    %c0_i32 = arith.constant 0 : i32
    return %arg0, %arg2 : i32, i32
  }
  func.func @transform_1(%arg0: i32, %arg1: i32, %arg2: i32) -> (i32, i32) {
    %c0_i32 = arith.constant 0 : i32
    return %arg2, %arg1 : i32, i32
  }
  func.func @transform_2(%arg0: i32, %arg1: i32, %arg2: i32) -> (i32, i32) {
    %c0_i32 = arith.constant 0 : i32
    %c0_i32_0 = arith.constant 0 : i32
    return %c0_i32, %arg1 : i32, i32
  }
  func.func @transform_3(%arg0: i32, %arg1: i32, %arg2: i32) -> (i32, i32) {
    %c0_i32 = arith.constant 0 : i32
    return %arg0, %arg1 : i32, i32
  }
}

module attributes {stable_mosaic.version = 11 : i64} {
  func.func @_head_kernel(%arg0: i32, %arg1: memref<16x512xf32, #tpu.memory_space<vmem>>, %arg2: memref<512x128xf32, #tpu.memory_space<vmem>>, %arg3: memref<1x128xf32, #tpu.memory_space<vmem>>, %arg4: memref<1x128xf32, #tpu.memory_space<vmem>>, %arg5: memref<1x1xf32, #tpu.memory_space<vmem>>, %arg6: memref<16x128xf32, #tpu.memory_space<vmem>>) attributes {dimension_semantics = [#tpu.dimension_semantics<parallel>], iteration_bounds = array<i64: 1>, scalar_prefetch = 0 : i64, scratch_operands = 0 : i64, tpu.core_type = #tpu.core_type<tc>, window_params = [{transform_indices = @transform_0, window_bounds = array<i64: 16, 512>}, {pipeline_mode = #tpu.pipeline_mode<synchronous>, transform_indices = @transform_1, window_bounds = array<i64: 512, 128>}, {pipeline_mode = #tpu.pipeline_mode<synchronous>, transform_indices = @transform_2, window_bounds = array<i64: 1, 128>}, {pipeline_mode = #tpu.pipeline_mode<synchronous>, transform_indices = @transform_3, window_bounds = array<i64: 1, 128>}, {pipeline_mode = #tpu.pipeline_mode<synchronous>, transform_indices = @transform_4, window_bounds = array<i64: 1, 1>}, {transform_indices = @transform_5, window_bounds = array<i64: 16, 128>}]} {
    %c0 = arith.constant 0 : index
    %c0_0 = arith.constant 0 : index
    %0 = vector.load %arg1[%c0, %c0_0] : memref<16x512xf32, #tpu.memory_space<vmem>>, vector<16x512xf32>
    %c0_1 = arith.constant 0 : index
    %c0_2 = arith.constant 0 : index
    %1 = vector.load %arg2[%c0_1, %c0_2] : memref<512x128xf32, #tpu.memory_space<vmem>>, vector<512x128xf32>
    %cst = arith.constant dense<0.000000e+00> : vector<16x128xf32>
    %2 = tpu.matmul %0, %1, %cst {dimension_numbers = #tpu.dot_dimension_numbers<[1], [0], [0], [1], [0, 0, 1, 1], [], []>} : vector<16x512xf32>, vector<512x128xf32>, vector<16x128xf32> -> vector<16x128xf32>
    %c0_3 = arith.constant 0 : index
    %c0_4 = arith.constant 0 : index
    %3 = vector.load %arg3[%c0_3, %c0_4] : memref<1x128xf32, #tpu.memory_space<vmem>>, vector<1x128xf32>
    %4 = vector.broadcast %3 : vector<1x128xf32> to vector<16x128xf32>
    %5 = arith.addf %2, %4 : vector<16x128xf32>
    %cst_5 = arith.constant 0.000000e+00 : f32
    %6 = vector.broadcast %cst_5 : f32 to vector<16x128xf32>
    %7 = arith.maximumf %5, %6 : vector<16x128xf32>
    %c0_6 = arith.constant 0 : index
    %c0_7 = arith.constant 0 : index
    %8 = vector.load %arg4[%c0_6, %c0_7] : memref<1x128xf32, #tpu.memory_space<vmem>>, vector<1x128xf32>
    %9 = vector.broadcast %8 : vector<1x128xf32> to vector<16x128xf32>
    %10 = arith.mulf %7, %9 : vector<16x128xf32>
    %cst_8 = arith.constant dense<0.000000e+00> : vector<16xf32>
    %11 = vector.multi_reduction <add>, %10, %cst_8 [1] : vector<16x128xf32> to vector<16xf32>
    %12 = vector.shape_cast %11 : vector<16xf32> to vector<16x1xf32>
    %c0_9 = arith.constant 0 : index
    %c0_10 = arith.constant 0 : index
    %13 = vector.load %arg5[%c0_9, %c0_10] : memref<1x1xf32, #tpu.memory_space<vmem>>, vector<1x1xf32>
    %14 = vector.broadcast %13 : vector<1x1xf32> to vector<16x1xf32>
    %15 = arith.addf %12, %14 : vector<16x1xf32>
    %16 = math.tanh %15 : vector<16x1xf32>
    %17 = vector.shape_cast %16 : vector<16x1xf32> to vector<16x1xf32>
    %18 = vector.broadcast %17 : vector<16x1xf32> to vector<16x128xf32>
    %c0_11 = arith.constant 0 : index
    %c0_12 = arith.constant 0 : index
    %19 = vector.load %arg6[%c0_11, %c0_12] : memref<16x128xf32, #tpu.memory_space<vmem>>, vector<16x128xf32>
    tpu.vector_store %arg6[%c0_11, %c0_12], %18 {strides = array<i32>} : memref<16x128xf32, #tpu.memory_space<vmem>>, vector<16x128xf32>,
    return
  }
  func.func @transform_0(%arg0: i32) -> (i32, i32) {
    %c0_i32 = arith.constant 0 : i32
    %c0_i32_0 = arith.constant 0 : i32
    return %arg0, %c0_i32 : i32, i32
  }
  func.func @transform_1(%arg0: i32) -> (i32, i32) {
    %c0_i32 = arith.constant 0 : i32
    %c0_i32_0 = arith.constant 0 : i32
    %c0_i32_1 = arith.constant 0 : i32
    return %c0_i32, %c0_i32_0 : i32, i32
  }
  func.func @transform_2(%arg0: i32) -> (i32, i32) {
    %c0_i32 = arith.constant 0 : i32
    %c0_i32_0 = arith.constant 0 : i32
    %c0_i32_1 = arith.constant 0 : i32
    return %c0_i32, %c0_i32_0 : i32, i32
  }
  func.func @transform_3(%arg0: i32) -> (i32, i32) {
    %c0_i32 = arith.constant 0 : i32
    %c0_i32_0 = arith.constant 0 : i32
    %c0_i32_1 = arith.constant 0 : i32
    return %c0_i32, %c0_i32_0 : i32, i32
  }
  func.func @transform_4(%arg0: i32) -> (i32, i32) {
    %c0_i32 = arith.constant 0 : i32
    %c0_i32_0 = arith.constant 0 : i32
    %c0_i32_1 = arith.constant 0 : i32
    return %c0_i32, %c0_i32_0 : i32, i32
  }
  func.func @transform_5(%arg0: i32) -> (i32, i32) {
    %c0_i32 = arith.constant 0 : i32
    %c0_i32_0 = arith.constant 0 : i32
    return %arg0, %c0_i32 : i32, i32
  }
}

</mosaic_0001>

<bundles_post_ra>
// kernel: forward.3
= control target key start
LH: loop header
LB: loop body
LE: loop exit
PB: predicated region body
PF: predicated region fallthrough
CT: control target
= control target key end

     0   :  { %s705_s1 = inlined_call_operand.vmem [shape: f32[512,128], index: 1, kind: input, shape index: {}]   ;;  %s706_s0 = inlined_call_operand.vmem [shape: f32[16,512], index: 0, kind: input, shape index: {}]   ;;  %s707_s4 = inlined_call_operand.<no memory space> [shape: f32[1,1], index: 4, kind: input, shape index: {}]   ;;  %s708_s2 = inlined_call_operand.vmem [shape: f32[1,128], index: 2, kind: input, shape index: {}]   ;;  %s709_s3 = inlined_call_operand.vmem [shape: f32[1,128], index: 3, kind: input, shape index: {}]   ;;  %s710_s5 = inlined_call_operand.vmem [shape: f32[16,128], index: 5, kind: output, shape index: {}]  }
   0x1   :  { %v46_v0 = vld [vmem:[%s705_s1 + $0x80] sm:$0xff]  ;;  %v47_v1 = vld [vmem:[%s705_s1 + $0x88] sm:$0xff]  ;;  %v48_v11 = vld [vmem:[%s705_s1 + $0x90] sm:$0xff] }
   0x2   :  { %v30_v2 = vld [vmem:[%s705_s1] sm:$0xff]  ;;  %v372_v3 = vpack.c.bf16 %v47_v1, %v46_v0  ;;  %v31_v4 = vld [vmem:[%s705_s1 + $0x8] sm:$0xff]  ;;  %v49_v13 = vld [vmem:[%s705_s1 + $0x98] sm:$0xff] }
   0x3   :  { %v78_v5 = vld [vmem:[%s705_s1 + $0x180] sm:$0xff]  ;;  %v79_v6 = vld [vmem:[%s705_s1 + $0x188] sm:$0xff]  ;;  %v374_v7 = vpack.c.bf16 %v31_v4, %v30_v2  ;;  %v32_v14 = vld [vmem:[%s705_s1 + $0x10] sm:$0xff]  ;;  %v376_v16 = vpack.c.bf16 %v49_v13, %v48_v11 }
   0x4   :  { %v404_v8 = vpack.c.bf16 %v79_v6, %v78_v5  ;;  %v62_v9 = vld [vmem:[%s705_s1 + $0x100] sm:$0xff]  ;;  %v63_v10 = vld [vmem:[%s705_s1 + $0x108] sm:$0xff]  ;;  %373 = vmatprep.subr.bf16.mxu0 %v372_v3  ;;  %v33_v15 = vld [vmem:[%s705_s1 + $0x18] sm:$0xff] }
   0x5   :  { %v406_v12 = vpack.c.bf16 %v63_v10, %v62_v9  ;;  %375 = vmatpush3.bf16.msra.mxu0 %v374_v7  ;;  %v378_v17 = vpack.c.bf16 %v33_v15, %v32_v14  ;;  %v80_v18 = vld [vmem:[%s705_s1 + $0x190] sm:$0xff]  ;;  %v81_v19 = vld [vmem:[%s705_s1 + $0x198] sm:$0xff]  ;;  %v50_v23 = vld [vmem:[%s705_s1 + $0xa0] sm:$0xff] }
   0x6   :  { %405 = vmatprep.subr.bf16.mxu1 %v404_v8  ;;  %v64_v20 = vld [vmem:[%s705_s1 + $0x110] sm:$0xff]  ;;  %v408_v21 = vpack.c.bf16 %v81_v19, %v80_v18  ;;  %v65_v22 = vld [vmem:[%s705_s1 + $0x118] sm:$0xff]  ;;  %v51_v24 = vld [vmem:[%s705_s1 + $0xa8] sm:$0xff]  ;;  %377 = vmatprep.subr.bf16.mxu0 %v376_v16 }
   0x7   :  { %407 = vmatpush3.bf16.msra.mxu1 %v406_v12  ;;  %v410_v25 = vpack.c.bf16 %v65_v22, %v64_v20  ;;  %v380_v26 = vpack.c.bf16 %v51_v24, %v50_v23  ;;  %v34_v27 = vld [vmem:[%s705_s1 + $0x20] sm:$0xff]  ;;  %v35_v28 = vld [vmem:[%s705_s1 + $0x28] sm:$0xff]  ;;  %v52_v35 = vld [vmem:[%s705_s1 + $0xb0] sm:$0xff] }
   0x8   :  { %v82_v29 = vld [vmem:[%s705_s1 + $0x1a0] sm:$0xff]  ;;  %409 = vmatprep.subr.bf16.mxu1 %v408_v21  ;;  %v83_v30 = vld [vmem:[%s705_s1 + $0x1a8] sm:$0xff]  ;;  %v382_v33 = vpack.c.bf16 %v35_v28, %v34_v27  ;;  %v53_v36 = vld [vmem:[%s705_s1 + $0xb8] sm:$0xff] }
   0x9   :  { %v66_v31 = vld [vmem:[%s705_s1 + $0x120] sm:$0xff]  ;;  %v67_v32 = vld [vmem:[%s705_s1 + $0x128] sm:$0xff]  ;;  %379 = vmatpush3.bf16.msra.mxu0 %v378_v17  ;;  %v412_v34 = vpack.c.bf16 %v83_v30, %v82_v29  ;;  %v36_v37 = vld [vmem:[%s705_s1 + $0x30] sm:$0xff]  ;;  %v384_v39 = vpack.c.bf16 %v53_v36, %v52_v35 }
   0xa   :  { %381 = vmatprep.subr.bf16.mxu0 %v380_v26  ;;  %v414_v38 = vpack.c.bf16 %v67_v32, %v66_v31  ;;  %v37_v40 = vld [vmem:[%s705_s1 + $0x38] sm:$0xff]  ;;  %v84_v41 = vld [vmem:[%s705_s1 + $0x1b0] sm:$0xff]  ;;  %v54_v46 = vld [vmem:[%s705_s1 + $0xc0] sm:$0xff] }
   0xb   :  { %411 = vmatpush3.bf16.msra.mxu1 %v410_v25  ;;  %v85_v42 = vld [vmem:[%s705_s1 + $0x1b8] sm:$0xff]  ;;  %v68_v44 = vld [vmem:[%s705_s1 + $0x130] sm:$0xff]  ;;  %v55_v47 = vld [vmem:[%s705_s1 + $0xc8] sm:$0xff]  ;;  %v386_v48 = vpack.c.bf16 %v37_v40, %v36_v37  ;;  %v10_v40 = vstv %s707_s4 }
   0xc   :  { %413 = vmatprep.subr.bf16.mxu1 %v412_v34  ;;  %v416_v43 = vpack.c.bf16 %v85_v42, %v84_v41  ;;  %v69_v45 = vld [vmem:[%s705_s1 + $0x138] sm:$0xff]  ;;  %v86_v49 = vld [vmem:[%s705_s1 + $0x1c0] sm:$0xff]  ;;  %v87_v50 = vld [vmem:[%s705_s1 + $0x1c8] sm:$0xff]  ;;  %v388_v52 = vpack.c.bf16 %v55_v47, %v54_v46  ;;  %11 = vst [vmem:[#allocation2] sm:$0x1] %v10_v40 }
   0xd   :  { %383 = vmatpush3.bf16.msra.mxu0 %v382_v33  ;;  %v418_v51 = vpack.c.bf16 %v69_v45, %v68_v44  ;;  %v38_v53 = vld [vmem:[%s705_s1 + $0x40] sm:$0xff]  ;;  %v39_v54 = vld [vmem:[%s705_s1 + $0x48] sm:$0xff]  ;;  %v420_v56 = vpack.c.bf16 %v87_v50, %v86_v49  ;;  %v56_v58 = vld [vmem:[%s705_s1 + $0xd0] sm:$0xff] }
   0xe   :  { %385 = vmatprep.subr.bf16.mxu0 %v384_v39  ;;  %v70_v55 = vld [vmem:[%s705_s1 + $0x140] sm:$0xff]  ;;  %v71_v57 = vld [vmem:[%s705_s1 + $0x148] sm:$0xff]  ;;  %v57_v59 = vld [vmem:[%s705_s1 + $0xd8] sm:$0xff]  ;;  %v390_v62 = vpack.c.bf16 %v39_v54, %v38_v53 }
   0xf   :  { %415 = vmatpush3.bf16.msra.mxu1 %v414_v38  ;;  %v88_v60 = vld [vmem:[%s705_s1 + $0x1d0] sm:$0xff]  ;;  %v89_v61 = vld [vmem:[%s705_s1 + $0x1d8] sm:$0xff]  ;;  %v422_v63 = vpack.c.bf16 %v71_v57, %v70_v55  ;;  %v392_v0 = vpack.c.bf16 %v57_v59, %v56_v58  ;;  %v58_v6 = vld [vmem:[%s705_s1 + $0xe0] sm:$0xff] }
  0x10   :  { %417 = vmatprep.subr.bf16.mxu1 %v416_v43  ;;  %v40_v1 = vld [vmem:[%s705_s1 + $0x50] sm:$0xff]  ;;  %v41_v2 = vld [vmem:[%s705_s1 + $0x58] sm:$0xff]  ;;  %v424_v4 = vpack.c.bf16 %v89_v61, %v88_v60  ;;  %v59_v7 = vld [vmem:[%s705_s1 + $0xe8] sm:$0xff] }
  0x11   :  { %387 = vmatpush3.bf16.msra.mxu0 %v386_v48  ;;  %v72_v3 = vld [vmem:[%s705_s1 + $0x150] sm:$0xff]  ;;  %v73_v5 = vld [vmem:[%s705_s1 + $0x158] sm:$0xff]  ;;  %v90_v8 = vld [vmem:[%s705_s1 + $0x1e0] sm:$0xff]  ;;  %v394_v10 = vpack.c.bf16 %v41_v2, %v40_v1  ;;  %v396_v14 = vpack.c.bf16 %v59_v7, %v58_v6 }
  0x12   :  { %389 = vmatprep.subr.bf16.mxu0 %v388_v52  ;;  %v91_v9 = vld [vmem:[%s705_s1 + $0x1e8] sm:$0xff]  ;;  %v42_v11 = vld [vmem:[%s705_s1 + $0x60] sm:$0xff]  ;;  %v426_v13 = vpack.c.bf16 %v73_v5, %v72_v3  ;;  %v60_v19 = vld [vmem:[%s705_s1 + $0xf0] sm:$0xff] }
  0x13   :  { %419 = vmatpush3.bf16.msra.mxu1 %v418_v51  ;;  %v43_v12 = vld [vmem:[%s705_s1 + $0x68] sm:$0xff]  ;;  %v74_v15 = vld [vmem:[%s705_s1 + $0x160] sm:$0xff]  ;;  %v428_v18 = vpack.c.bf16 %v91_v9, %v90_v8  ;;  %v61_v20 = vld [vmem:[%s705_s1 + $0xf8] sm:$0xff] }
  0x14   :  { %421 = vmatprep.subr.bf16.mxu1 %v420_v56  ;;  %v75_v16 = vld [vmem:[%s705_s1 + $0x168] sm:$0xff]  ;;  %v25_v21 = vld [vmem:[%s706_s0 + $0x18] sm:$0xff]  ;;  %v92_v22 = vld [vmem:[%s705_s1 + $0x1f0] sm:$0xff]  ;;  %v398_v24 = vpack.c.bf16 %v43_v12, %v42_v11  ;;  %v400_v26 = vpack.c.bf16 %v61_v20, %v60_v19 }
  0x15   :  { %391 = vmatpush3.bf16.msra.mxu0 %v390_v62  ;;  %v23_v17 = vld [vmem:[%s706_s0 + $0x8] sm:$0xff]  ;;  %v93_v23 = vld [vmem:[%s705_s1 + $0x1f8] sm:$0xff]  ;;  %240 = vmatprep.mubr.f32.mxu1 %v25_v21  ;;  %v430_v25 = vpack.c.bf16 %v75_v16, %v74_v15  ;;  %v44_v27 = vld [vmem:[%s705_s1 + $0x70] sm:$0xff] }
  0x16   :  { %393 = vmatprep.subr.bf16.mxu0 %v392_v0  ;;  %165 = vmatprep.mubr.f32.mxu0 %v23_v17  ;;  %v45_v28 = vld [vmem:[%s705_s1 + $0x78] sm:$0xff]  ;;  %v432_v29 = vpack.c.bf16 %v93_v23, %v92_v22  ;;  %v76_v30 = vld [vmem:[%s705_s1 + $0x170] sm:$0xff]  ;;  %v22_v34 = vld [vmem:[%s706_s0] sm:$0xff] }
  0x17   :  { %423 = vmatpush3.bf16.msra.mxu1 %v422_v63  ;;  %v77_v31 = vld [vmem:[%s705_s1 + $0x178] sm:$0xff]  ;;  %v402_v32 = vpack.c.bf16 %v45_v28, %v44_v27  ;;  %v24_v35 = vld [vmem:[%s706_s0 + $0x10] sm:$0xff]  ;;  %v27_v36 = vld [vmem:[%s706_s0 + $0x28] sm:$0xff]  ;;  %v443_v63 = vmov 0  }
  0x18   :  { %425 = vmatprep.subr.bf16.mxu1 %v424_v4  ;;  %v434_v33 = vpack.c.bf16 %v77_v31, %v76_v30  ;;  %v29_v37 = vld [vmem:[%s706_s0 + $0x38] sm:$0xff]  ;;  %v26_v38 = vld [vmem:[%s706_s0 + $0x20] sm:$0xff]  ;;  %v28_v39 = vld [vmem:[%s706_s0 + $0x30] sm:$0xff]  ;;  %437 = vset.pattern.permute.xlu1 %v443_v63 }
  0x19   :  { %395 = vmatpush3.bf16.msra.mxu0 %v394_v10  ;;  %v293_v42 = vld [vmem:[%s708_s2] ss:$0 sm:$0xff]  ;;  %438 = vset.pattern.permute.xlu0 %v443_v63 }
  0x1a   :  { %397 = vmatprep.subr.bf16.mxu0 %v396_v14  ;;  %v294_v56 = vld [vmem:[%s709_s3] ss:$0 sm:$0xff] }
  0x1b   :  { %427 = vmatpush3.bf16.msra.mxu1 %v426_v13  ;;  %v295_v0 = vld [vmem:[#allocation2] ss:$0 sm:$0xff] }
  0x1c   :  { %429 = vmatprep.subr.bf16.mxu1 %v428_v18 }
  0x1d   :  { %399 = vmatpush3.bf16.msra.mxu0 %v398_v24 }
  0x1e   :  { %401 = vmatprep.subr.bf16.mxu0 %v400_v26 }
  0x1f   :  { %431 = vmatpush3.bf16.msra.mxu1 %v430_v25 }
  0x20   :  { %433 = vmatprep.subr.bf16.mxu1 %v432_v29 }
  0x21   :  { %403 = vmatpush3.bf16.msra.mxu0 %v402_v32 }
  0x23   :  { %435 = vmatpush3.bf16.msra.mxu1 %v434_v33 }
  0x24   :  { %166 = vmatmul.mubr.f32.vlgmr.msra.gmra.mrb[0].mxu0 %v22_v34 }
  0x25   :  { %170 = vmatprep.mubr.f32.mxu0 %v27_v36 }
  0x26   :  { %241 = vmatmul.mubr.f32.vlgmr.msra.gmra.mrb[0].mxu1 %v24_v35 }
  0x27   :  { %245 = vmatprep.mubr.f32.mxu1 %v29_v37 }
  0x28   :  { %171 = vmatmul.mubr.f32.gmra.mrb[2].mxu0 %v26_v38 }
  0x2a   :  { %246 = vmatmul.mubr.f32.gmra.mrb[2].mxu1 %v28_v39 }
  0xf7   :  { %v328_v41 = vpop.f32.mrb[0].mxu0 }
  0xf8   :  { %v329_v43 = vpop.f32.mrb[1].mxu0 }
  0xf9   :  { %v366_v44 = vpop.f32.mrb[0].mxu1  ;;  %v330_v45 = vadd.f32 %v329_v43, %v328_v41 }
  0xfa   :  { %v367_v46 = vpop.f32.mrb[1].mxu1 }
  0xfb   :  { %v368_v47 = vadd.f32 %v367_v46, %v366_v44  ;;  %v168_v48 = vadd.f32 %v330_v45, %v293_v42  ;;  %v331_v49 = vpop.f32.mrb[2].mxu0 }
  0xfc   :  { %v332_v50 = vpop.f32.mrb[3].mxu0 }
  0xfd   :  { %v369_v51 = vpop.f32.mrb[2].mxu1  ;;  %v333_v52 = vadd.f32 %v332_v50, %v331_v49  ;;  %v243_v54 = vadd.f32 %v368_v47, %v168_v48 }
  0xfe   :  { %v370_v53 = vpop.f32.mrb[3].mxu1 }
  0xff   :  { %v371_v55 = vadd.f32 %v370_v53, %v369_v51  ;;  %v173_v57 = vadd.f32 %v333_v52, %v293_v42  ;;  %v251_v58 = vmax.f32 %v243_v54, 0.0 }
 0x101   :  { %v248_v59 = vadd.f32 %v371_v55, %v173_v57  ;;  %v260_v60 = vmul.f32 %v294_v56, %v251_v58 }
 0x103   :  { %v252_v61 = vmax.f32 %v248_v59, 0.0  ;;  %262 = vadd.xlane.f32.xlu0 %v260_v60 }
 0x105   :  { %v261_v62 = vmul.f32 %v294_v56, %v252_v61 }
 0x107   :  { %264 = vadd.xlane.f32.xlu0 %v261_v62 }
 0x190   :  { %v263_v1 = vpop.xlane.xlu0 %262 }
 0x191   :  { %v273_v2 = vadd.f32 %v295_v0, %v263_v1 }
 0x193   :  { %439 = vtanh.f32 %v273_v2 }
 0x194   :  { %v265_v3 = vpop.xlane.xlu0 %264 }
 0x195   :  { %v274_v4 = vadd.f32 %v295_v0, %v265_v3 }
 0x197   :  { %441 = vtanh.f32 %v274_v4 }
 0x19d   :  { %v440_v5 = vpop.eup %439 }
 0x19e   :  { %279 = vperm.xlu1 %437, %v440_v5  }
 0x1a1   :  { %v442_v6 = vpop.eup %441 }
 0x1a2   :  { %284 = vperm.xlu1 %437, %v442_v6  }
 0x21d   :  { %v280_v7 = vpop.permute.xlu1 %279 }
 0x21e   :  { %287 = vst [vmem:[%s710_s5] sm:$0xff] %v280_v7 }
 0x221   :  { %v285_v8 = vpop.permute.xlu1 %284 }
 0x222   :  { %288 = vst [vmem:[%s710_s5 + $0x8] sm:$0xff] %v285_v8 }

// kernel: forward.2
= control target key start
LH: loop header
LB: loop body
LE: loop exit
PB: predicated region body
PF: predicated region fallthrough
CT: control target
= control target key end

     0   :  { %s1367_s0 = inlined_call_operand.vmem [shape: bf16[16,256], index: 0, kind: input, shape index: {}]   ;;  %s1368_s1 = inlined_call_operand.hbm [shape: bf16[256,512], index: 1, kind: input, shape index: {}]   ;;  %s1369_s2 = inlined_call_operand.hbm [shape: f32[1,512], index: 2, kind: input, shape index: {}]   ;;  %s1370_s3 = inlined_call_operand.vmem [shape: f32[16,512], index: 3, kind: output, shape index: {}]  }
   0x1   :  { %1376 = sst [smem:[#allocation18_spill]] %s1367_s0 }
   0x2   :  { %1377 = sst [smem:[#allocation19_spill]] %s1368_s1 }
   0x3   :  { %1378 = sst [smem:[#allocation20_spill]] %s1370_s3 }
   0x4   :  { %8 = vsyncpa [#allocation5], 0 }
   0x5   :  { %10 = vsyncpa [#allocation5 + $0x1], 0 }
   0x6   :  { %11 = vsyncpa [#allocation7], 0 }
   0x7   :  { %13 = vsyncpa [#allocation7 + $0x1], 0  ;;  %s1065_s12 = smov 0   ;;  %s1067_s13 = smov 0  }
   0x8   :  { %s1069_s14 = smov 0   ;;  %s1071_s15 = smov 0  }
   0x9   :  { %s1073_s16 = smov 0   ;;  %s1075_s17 = smov 0  }
   0xa   :  { %s1077_s18 = smov 0   ;;  %s1079_s19 = smov 0  }
   0xb   :  { %s1081_s20 = smov 0   ;;  %s1083_s21 = smov 0  }
   0xc   :  { %s1085_s22 = smov 0   ;;  %s1087_s23 = smov 0  }
   0xd   :  { %s1089_s24 = smov 0  }
   0xe LB: > { %1379 = sst [smem:[#allocation11_spill]] %s1016_s19  ;;  %s686_s25 = sadd.s32 4294967295, %s1036_s24   ;;  %s1036_s24 = sphi %s1089_s24, %s19_s24   ;;  %s1032_s23 = sphi %s1087_s23, %s1416_s23   ;;  %s1028_s22 = sphi %s1085_s22, %s1415_s22   ;;  %s1024_s21 = sphi %s1083_s21, %s1414_s21   ;;  %s1020_s20 = sphi %s1081_s20, %s1413_s20   ;;  %s1016_s19 = sphi %s1079_s19, %s1412_s19   ;;  %s1012_s18 = sphi %s1077_s18, %s1402_s18   ;;  %s1008_s17 = sphi %s1075_s17, %s1411_s17   ;;  %s1004_s16 = sphi %s1073_s16, %s1410_s16   ;;  %s1000_s15 = sphi %s1071_s15, %s1409_s15   ;;  %s996_s14 = sphi %s1069_s14, %s1408_s14   ;;  %s992_s13 = sphi %s1067_s13, %s1407_s13   ;;  %s988_s12 = sphi %s1065_s12, %s1406_s12  }
   0xf   : > { %1380 = sst [smem:[#allocation12_spill]] %s1024_s21  ;;  %s31_s26 = sadd.s32 1, %s1028_s22 }
  0x10   : > { %p32_p0 = scmp.ge.s32.totalorder %s31_s26, 2  ;;  %s34_s27 = sadd.s32 1, %s1032_s23 }
  0x11   : > { %s47_s28 = sadd.s32 1, %s1016_s19  ;;  %p54_p1 = scmp.ne.s32.totalorder %s1016_s19, %s1012_s18 }
  0x12   : > { %s1418_s26 = smov (%p32_p0, %s31_s26), 0  ;;  %s1420_s27 = smov (!%p32_p0, %s34_s27), %s1032_s23 }
  0x13   : > { %1381 = sst [smem:[#allocation13_spill]] %s1418_s26  ;;  %s43_s29 = ssub.s32 %s1028_s22, %s1418_s26 }
  0x14   : > { %p55_p2 = scmp.eq.s32.totalorder %s1036_s24, 0  ;;  %p36_p3 = scmp.ge.s32.totalorder %s1420_s27, 2 }
  0x15   : > { %p45_p4 = scmp.eq.s32.totalorder %s43_s29, 0  ;;  %s75_s4 = sadd.s32 1, %s1008_s17 }
  0x16   : > { %p1144_p5 = por %p55_p2, %p54_p1  ;;  %s1422_s27 = smov (%p36_p3, %s1420_s27), 0 }
  0x17   : > { %1383 = sst [smem:[#allocation14_spill]] %s1422_s27  ;;  %s71_s6 = ssub.s32 %s1032_s23, %s1422_s27 }
  0x18   : > { %s1152_s5 = scalar_select %p45_p4, %s1016_s19, %s47_s28  }
  0x19   : > { %p82_p6 = scmp.ne.s32.totalorder %s1008_s17, %s1004_s16  ;;  %s72_s7 = sor.u32 %s71_s6, %s43_s29 }
  0x1a   : > { %1384 = sst [smem:[#allocation15_spill]] %s1152_s5  ;;  %p88_p7 = scmp.ne.s32.totalorder %s1004_s16, %s1000_s15 }
  0x1b   : > { %p73_p8 = scmp.eq.s32.totalorder %s72_s7, 0  ;;  %p1162_p9 = por %p82_p6, %p55_p2 }
  0x1c   : > { %p89_p10 = scmp.eq.s32.totalorder %s686_s25, 0  ;;  %p99_p11 = scmp.eq.s32.totalorder %s71_s6, 0 }
  0x1d   : > { %s1169_s9 = scalar_select %p73_p8, %s1008_s17, %s75_s4  }
  0x1e   : > { %p1171_p12 = por %p89_p10, %p88_p7  ;;  %s101_s11 = sadd.s32 1, %s996_s14 }
  0x1f   : > { %1386 = sst [smem:[#allocation16_spill]] %s1169_s9  ;;  %p108_p13 = scmp.ne.s32.totalorder %s996_s14, %s992_s13 }
  0x20   : > { %s1387_s10 = scalar_select %p1171_p12, 1, 0 }
  0x21   : > { %s1177_s28 = scalar_select %p99_p11, %s996_s14, %s101_s11  }
  0x22   : > { %p114_p0 = scmp.ne.s32.totalorder %s992_s13, %s988_s12  ;;  %p140_p1 = scmp.eq.s32.totalorder %s686_s25, 3 }
  0x23   : > { %1388 = sst [smem:[#allocation17_spill]] %s1177_s28  ;;  %p1187_p3 = por %p108_p13, %p55_p2 }
  0x24   : > { %p1191_p4 = por %p114_p0, %p89_p10  ;;  %p1195_p6 = por %p140_p1, %p108_p13 }
  0x25   : > { %p689_p7 = scmp.ge.s32.totalorder %s1036_s24, 4 }
  0x26   : > { %s1390_s29 = scalar_select %p1191_p4, 1, 0 }
  0x27   : > { %s1391_s4 = scalar_select %p1195_p6, 1, 0 }
  0x28   : > { %162 = sbr.rel (%p689_p7) target bundleno = 117 (0x75), region = 16 }
  0x2f   : > { %165 = sbr.rel (!%p1144_p5) target bundleno = 58 (0x3a), region = 20  ;;  %s167_s12 = sand.u32 (%p1144_p5), 1, %s1016_s19  }
  0x30   : > { %s691_s25 = sshll.u32 (%p1144_p5), %s1028_s22, 2  ;;  %s690_s6 = sshll.u32 (%p1144_p5), %s167_s12, 3 }
  0x31   : > { %s1392_s0 = sld [smem:[#allocation18_spill]] (%p1144_p5)  ;;  %s169_s26 = scalar_lea.vmem (%p1144_p5), [#allocation3], %s690_s6 }
  0x37   : > { %s174_s27 = scalar_lea.vmem %s1392_s0, %s691_s25 }
  0x38   : > { %v190_v0 = vld [vmem:[%s174_s27] sm:$0xf]  ;;  %v192_v1 = vld [vmem:[%s174_s27 + $0x8] sm:$0xf] }
  0x39   : > { %191 = vst [vmem:[%s169_s26] sm:$0xf] %v190_v0  ;;  %193 = vst [vmem:[%s169_s26 + $0x4] sm:$0xf] %v192_v1 }
  0x3a PF: > { %s221_s30 = sand.u32 1, %s1008_s17   ;;  %s694_s5 = sshll.u32 %s1032_s23, 1 }
  0x3b   : > { %s692_s9 = sshll.u32 %s221_s30, 7  ;;  %s729_s19 = sshll.u32 %s1028_s22, 6 }
  0x3c   : > { %s232_s28 = sadd.s32 %s729_s19, %s694_s5  ;;  %s225_s12 = scalar_lea.vmem [#allocation4], %s692_s9 }
  0x3d   : > { %s235_s3 = sshll.u32 %s225_s12, 4  ;;  %s696_s21 = sshll.u32 %s232_s28, 6  ;;  %s1210_s3 = int_to_ptr.vmem [resolvable:$true] %s235_s3 }
  0x3e   : > { %s1393_s1 = sld [smem:[#allocation19_spill]]  ;;  %s1217_s26 = scalar_lea.sflag [#allocation5], %s221_s30 }
  0x44   : > { %s1215_s6 = scalar_lea.hbm %s1393_s1, %s696_s21  ;;  %s874_s9 = scalar_lea.hbm %s1393_s1, 8192 }
  0x45   : > { %s870_s7 = scalar_lea.hbm %s1215_s6, 2048  ;;  %p875_p10 = scmp.lt.u32.totalorder %s1215_s6, %s1393_s1 }
  0x46   : > { %p871_p2 = scmp.ne.s32.totalorder %s1215_s6, %s870_s7  ;;  %p876_p11 = scmp.lt.u32.totalorder %s874_s9, %s870_s7 }
  0x47   : > { %p878_p0 = scmp.lt.u32.totalorder %s870_s7, %s1215_s6 }
  0x48   : > { %p872_p5 = pnand %p871_p2, %p1162_p9  ;;  %p877_p13 = por %p876_p11, %p875_p10 }
  0x4a   : > { %p873_p8 = pneg %p872_p5  ;;  %p879_p1 = por %p878_p0, %p877_p13 }
  0x4c   : > { %p880_p7 = pnand %p879_p1, %p873_p8 }
  0x4e   : > { %883 = shalt.err (!%p880_p7)
}
  0x4f   : > { %s884_s21 = scalar_lea.vmem %s1210_s3, 2048  ;;  %s1038_s30 = smov [#allocation4]  }
  0x50   : > { %p885_p2 = scmp.ne.s32.totalorder %s1210_s3, %s884_s21  ;;  %s888_s12 = sshll.u32 %s1038_s30, 4  ;;  %s889_s12 = int_to_ptr.vmem [resolvable:$false] %s888_s12 }
  0x51   : > { %s890_s25 = scalar_lea.vmem %s889_s12, 4096  ;;  %p891_p4 = scmp.lt.s32.totalorder %s1210_s3, %s889_s12 }
  0x52   : > { %p886_p5 = pnand %p885_p2, %p1162_p9  ;;  %p892_p12 = scmp.lt.s32.totalorder %s890_s25, %s884_s21 }
  0x54   : > { %p887_p6 = pneg %p886_p5  ;;  %p893_p10 = por %p892_p12, %p891_p4 }
  0x56   : > { %p894_p11 = pnand %p893_p10, %p887_p6 }
  0x58   : > { %897 = shalt.err (!%p894_p11)
}
  0x59   : > { %s1039_s27 = smov 256   ;;  %s1040_s7 = smov 128  }
  0x5a   : > { %s1041_s19 = smov 8   ;;  %s245_s5 = sand.u32 1, %s996_s14  }
  0x5b   : > { %732 = dma.hbm_to_vmem [thread:$0]  (%p1162_p9), %s1215_s6, 2048, %s1210_s3, %s1217_s26, %s1039_s27, %s1040_s7, %s1041_s19  }
  0x5c   : > { %s730_s9 = sshll.u32 %s1032_s23, 5  ;;  %s697_s28 = sshll.u32 %s245_s5, 1 }
  0x5d   : > { %s1246_s30 = scalar_lea.hbm %s1369_s2, %s730_s9  ;;  %s249_s12 = scalar_lea.vmem [#allocation6], %s697_s28 }
  0x5e   : > { %s257_s25 = sshll.u32 %s249_s12, 4  ;;  %s246_s0 = scalar_lea.sflag [#allocation7], %s245_s5  ;;  %s258_s25 = int_to_ptr.vmem [resolvable:$true] %s257_s25 }
  0x5f   : > { %s898_s1 = scalar_lea.hbm %s1246_s30, 32  ;;  %s902_s6 = scalar_lea.hbm %s1369_s2, 64 }
  0x60   : > { %p899_p12 = scmp.ne.s32.totalorder %s1246_s30, %s898_s1  ;;  %p903_p6 = scmp.lt.u32.totalorder %s1246_s30, %s1369_s2 }
  0x61   : > { %p904_p8 = scmp.lt.u32.totalorder %s902_s6, %s898_s1  ;;  %p906_p0 = scmp.lt.u32.totalorder %s898_s1, %s1246_s30 }
  0x62   : > { %p900_p9 = pnand %p899_p12, %p1187_p3 }
  0x63   : > { %p905_p13 = por %p904_p8, %p903_p6 }
  0x64   : > { %p901_p4 = pneg %p900_p9 }
  0x65   : > { %p907_p1 = por %p906_p0, %p905_p13 }
  0x67   : > { %p908_p7 = pnand %p907_p1, %p901_p4 }
  0x69   : > { %911 = shalt.err (!%p908_p7)
}
  0x6a   : > { %s912_s7 = scalar_lea.vmem %s258_s25, 32  ;;  %s1042_s19 = smov [#allocation6]  }
  0x6b   : > { %p913_p2 = scmp.ne.s32.totalorder %s258_s25, %s912_s7  ;;  %s916_s5 = sshll.u32 %s1042_s19, 4  ;;  %s917_s5 = int_to_ptr.vmem [resolvable:$false] %s916_s5 }
  0x6c   : > { %s918_s9 = scalar_lea.vmem %s917_s5, 64  ;;  %p919_p11 = scmp.lt.s32.totalorder %s258_s25, %s917_s5 }
  0x6d   : > { %p914_p5 = pnand %p913_p2, %p1187_p3  ;;  %p920_p12 = scmp.lt.s32.totalorder %s918_s9, %s912_s7 }
  0x6f   : > { %p915_p10 = pneg %p914_p5  ;;  %p921_p9 = por %p920_p12, %p919_p11 }
  0x71   : > { %p922_p6 = pnand %p921_p9, %p915_p10 }
  0x73   : > { %925 = shalt.err (!%p922_p6)
}
  0x74   : > { %733 = dma.hbm_to_vmem [thread:$0]  (%p1187_p3), %s1246_s30, 32, %s258_s25, %s246_s0  }
  0x75 PF: > { %p700_p4 = scmp.ge.s32.totalorder %s1036_s24, 1  ;;  %p262_p8 = scmp.lt.s32.totalorder %s1036_s24, 5 }
  0x77   : > { %p263_p13 = pnand %p700_p4, %p262_p8 }
  0x78   : > { %s269_s1 = sand.u32 (!%p263_p13), 1, %s1012_s18   ;;  %s275_s28 = sand.u32 (!%p263_p13), 1, %s1004_s16  }
  0x79   : > { %266 = sbr.rel (%p263_p13) target bundleno = 416 (0x1a0), region = 69  ;;  %s1269_s11 = sshll.u32 (!%p263_p13), %s269_s1, 3 }
  0x7a   : > { %s702_s21 = sshll.u32 (!%p263_p13), %s275_s28, 7  ;;  %s271_s12 = scalar_lea.vmem (!%p263_p13), [#allocation3], %s1269_s11 }
  0x7b   : > { %s276_s15 = scalar_lea.sflag (!%p263_p13), [#allocation5], %s275_s28  ;;  %s1272_s3 = scalar_lea.vmem (!%p263_p13), [#allocation4], %s702_s21 }
  0x7c   : > { %p1394_p3 = scmp.ne.s32.totalorder (!%p263_p13), %s1387_s10, 0 }
  0x80   : > { %979 = dma.done.wait (%p1394_p3), %s276_s15, 2048  }
  0x81   : > { %981 = vsyncadd (%p1394_p3), %s276_s15, 4294965248  ;;  %s284_s0 = sand.u32 1, %s992_s13   ;;  %p1395_p0 = scmp.ne.s32.totalorder %s1390_s29, 0 }
  0x82   : > { %s703_s30 = sshll.u32 %s284_s0, 1  ;;  %s285_s25 = scalar_lea.sflag [#allocation7], %s284_s0 }
  0x83   : > { %s1279_s18 = scalar_lea.vmem [#allocation6], %s703_s30 }
  0x84   : > { %983 = dma.done.wait (%p1395_p0), %s285_s25, 32  }
  0x85   : > { %985 = vsyncadd (%p1395_p0), %s285_s25, 4294967264  ;;  %s704_s8 = sshll.u32 %s284_s0, 5  ;;  %p705_p1 = scmp.ne.s32.totalorder %s1020_s20, 0 }
  0x86   : > { %s1285_s6 = scalar_lea.vmem [#allocation8], %s704_s8  ;;  %v1043_v2 = vmov (!%p705_p1), 0.0  }
  0x87   : > { %329 = sbr.rel (%p705_p1) target bundleno = 142 (0x8e), region = 85  ;;  %330 = vst [vmem:[#allocation2] sm:$0xff] (!%p705_p1), %v1043_v2  ;;  %331 = vst [vmem:[#allocation2 + $0x8] sm:$0xff] (!%p705_p1), %v1043_v2 }
  0x88   : > { %332 = vst [vmem:[#allocation2 + $0x10] sm:$0xff] (!%p705_p1), %v1043_v2  ;;  %333 = vst [vmem:[#allocation2 + $0x18] sm:$0xff] (!%p705_p1), %v1043_v2 }
  0x8e PF: > { %v845_v3 = vld [vmem:[%s1272_s3 + $0x4] ss:$8 sps:$4 sm:$0xff]   ;;  %v847_v4 = vld [vmem:[%s1272_s3] ss:$8 sps:$4 sm:$0xff]   ;;  %v1044_v5 = vmov 0   ;;  %v869_v20 = vld [vmem:[%s271_s12] sm:$0xff]  }
  0x8f   : > { %474 = vmatprep.mubr.bf16.mxu0 %v1044_v5  ;;  %442 = vmatprep.subr.bf16.mxu0 %v845_v3  ;;  %v848_v6 = vld [vmem:[%s1272_s3 + $0x14] ss:$8 sps:$4 sm:$0xff]   ;;  %v850_v7 = vld [vmem:[%s1272_s3 + $0x10] ss:$8 sps:$4 sm:$0xff]   ;;  %v851_v8 = vld [vmem:[%s1272_s3 + $0x24] ss:$8 sps:$4 sm:$0xff]  }
  0x90   : > { %443 = vmatpush1.bf16.msra.mxu0 %v847_v4  ;;  %v853_v9 = vld [vmem:[%s1272_s3 + $0x20] ss:$8 sps:$4 sm:$0xff]   ;;  %v854_v10 = vld [vmem:[%s1272_s3 + $0x34] ss:$8 sps:$4 sm:$0xff]   ;;  %v856_v11 = vld [vmem:[%s1272_s3 + $0x30] ss:$8 sps:$4 sm:$0xff]  }
  0x91   : > { %444 = vmatprep.subr.bf16.mxu0 %v848_v6  ;;  %v857_v12 = vld [vmem:[%s1272_s3 + $0x44] ss:$8 sps:$4 sm:$0xff]   ;;  %v859_v13 = vld [vmem:[%s1272_s3 + $0x40] ss:$8 sps:$4 sm:$0xff]   ;;  %v860_v14 = vld [vmem:[%s1272_s3 + $0x54] ss:$8 sps:$4 sm:$0xff]  }
  0x92   : > { %v862_v15 = vld [vmem:[%s1272_s3 + $0x50] ss:$8 sps:$4 sm:$0xff]   ;;  %v863_v16 = vld [vmem:[%s1272_s3 + $0x64] ss:$8 sps:$4 sm:$0xff]   ;;  %v865_v17 = vld [vmem:[%s1272_s3 + $0x60] ss:$8 sps:$4 sm:$0xff]  }
  0x93   : > { %v866_v18 = vld [vmem:[%s1272_s3 + $0x74] ss:$8 sps:$4 sm:$0xff]   ;;  %v868_v19 = vld [vmem:[%s1272_s3 + $0x70] ss:$8 sps:$4 sm:$0xff]   ;;  %v336_v24 = vld [vmem:[#allocation2 + $0x10] sm:$0xff]  ;;  %p723_p7 = scmp.ne.s32.totalorder %s1020_s20, 1 }
  0x94   : > { %445 = vmatpush1.bf16.msra.mxu0 %v850_v7  ;;  %v334_v21 = vld [vmem:[#allocation2] sm:$0xff]  ;;  %v335_v22 = vld [vmem:[#allocation2 + $0x8] sm:$0xff]  ;;  %v337_v27 = vld [vmem:[#allocation2 + $0x18] sm:$0xff]  ;;  %v503_v33 = vlaneseq (!%p723_p7) }
  0x95   : > { %446 = vmatprep.subr.bf16.mxu0 %v851_v8  ;;  %v501_v35 = vld [vmem:[%s1279_s18] sm:$0x3] (!%p723_p7) }
  0x96   : > { %v504_v34 = vshrl.u32 (!%p723_p7), %v503_v33, 7 }
  0x98   : > { %447 = vmatpush1.bf16.msra.mxu0 %v853_v9  ;;  %v505_v37 = vsub.s32 (!%p723_p7), 0, %v504_v34  ;;  %v509_v38 = vsub.s32 (!%p723_p7), 1, %v504_v34 }
  0x99   : > { %448 = vmatprep.subr.bf16.mxu0 %v854_v10 }
  0x9a   : > { %v506_v42 = vrot.slane (!%p723_p7), %v501_v35, %v505_v37  ;;  %v510_v43 = vrot.slane (!%p723_p7), %v501_v35, %v509_v38 }
  0x9c   : > { %449 = vmatpush1.bf16.msra.mxu0 %v856_v11 }
  0x9d   : > { %450 = vmatprep.subr.bf16.mxu0 %v857_v12 }
  0xa0   : > { %451 = vmatpush1.bf16.msra.mxu0 %v859_v13 }
  0xa1   : > { %452 = vmatprep.subr.bf16.mxu0 %v860_v14 }
  0xa4   : > { %453 = vmatpush1.bf16.msra.mxu0 %v862_v15 }
  0xa5   : > { %454 = vmatprep.subr.bf16.mxu0 %v863_v16 }
  0xa8   : > { %455 = vmatpush1.bf16.msra.mxu0 %v865_v17 }
  0xa9   : > { %456 = vmatprep.subr.bf16.mxu0 %v866_v18 }
  0xac   : > { %457 = vmatpush1.bf16.msra.mxu0 %v868_v19 }
  0xaf   : > { %475 = vmatmul.mubr.bf16.vlgmr.msra.gmra.mrb[0].mxu0 %v869_v20 }
 0x182   : > { %v476_v23 = vpop.f32.mrb[0].mxu0  ;;  %496 = sbr.rel (%p723_p7) target bundleno = 405 (0x195), region = 89 }
 0x183   : > { %v485_v25 = vadd.f32 %v476_v23, %v334_v21  ;;  %v478_v26 = vpop.f32.mrb[1].mxu0 }
 0x184   : > { %v486_v28 = vadd.f32 %v478_v26, %v335_v22  ;;  %v480_v29 = vpop.f32.mrb[2].mxu0 }
 0x185   : > { %489 = vst [vmem:[#allocation2] sm:$0xff] %v485_v25  ;;  %v487_v30 = vadd.f32 %v480_v29, %v336_v24  ;;  %v482_v31 = vpop.f32.mrb[3].mxu0 }
 0x186   : > { %490 = vst [vmem:[#allocation2 + $0x8] sm:$0xff] %v486_v28  ;;  %v488_v32 = vadd.f32 %v482_v31, %v337_v27 }
 0x187   : > { %491 = vst [vmem:[#allocation2 + $0x10] sm:$0xff] %v487_v30 }
 0x188   : > { %492 = vst [vmem:[#allocation2 + $0x18] sm:$0xff] %v488_v32 }
 0x18c   : > { %v497_v36 = vld [vmem:[#allocation2] sm:$0xff] }
 0x18d   : > { %v498_v39 = vld [vmem:[#allocation2 + $0x8] sm:$0xff]  ;;  %v513_v44 = vadd.f32 %v506_v42, %v497_v36 }
 0x18e   : > { %v499_v40 = vld [vmem:[#allocation2 + $0x10] sm:$0xff]  ;;  %v514_v45 = vadd.f32 %v510_v43, %v498_v39 }
 0x18f   : > { %v500_v41 = vld [vmem:[#allocation2 + $0x18] sm:$0xff]  ;;  %v515_v46 = vadd.f32 %v506_v42, %v499_v40  ;;  %v517_v48 = vmax.f32 %v513_v44, 0.0 }
 0x190   : > { %v516_v47 = vadd.f32 %v510_v43, %v500_v41  ;;  %v518_v49 = vmax.f32 %v514_v45, 0.0 }
 0x191   : > { %v519_v50 = vmax.f32 %v515_v46, 0.0  ;;  %521 = vst [vmem:[%s1285_s6] sm:$0xff] %v517_v48 }
 0x192   : > { %v520_v51 = vmax.f32 %v516_v47, 0.0  ;;  %522 = vst [vmem:[%s1285_s6 + $0x8] sm:$0xff] %v518_v49 }
 0x193   : > { %523 = vst [vmem:[%s1285_s6 + $0x10] sm:$0xff] %v519_v50 }
 0x194   : > { %524 = vst [vmem:[%s1285_s6 + $0x18] sm:$0xff] %v520_v51 }
 0x195 PF: > { %p1396_p2 = scmp.ne.s32.totalorder %s1391_s4, 0 }
 0x196   : > { %s1397_s20 = sld [smem:[#allocation12_spill]] (%p1396_p2)  ;;  %s1398_s27 = sld [smem:[#allocation20_spill]] (%p1396_p2) }
 0x197   : > { %531 = sbr.rel (!%p1396_p2) target bundleno = 416 (0x1a0), region = 93 }
 0x198   : > { %v550_v52 = vld [vmem:[%s1285_s6] sm:$0xff] (%p1396_p2) }
 0x199   : > { %v552_v53 = vld [vmem:[%s1285_s6 + $0x8] sm:$0xff] (%p1396_p2) }
 0x19a   : > { %v554_v54 = vld [vmem:[%s1285_s6 + $0x10] sm:$0xff] (%p1396_p2) }
 0x19b   : > { %v556_v55 = vld [vmem:[%s1285_s6 + $0x18] sm:$0xff] (%p1396_p2) }
 0x19c   : > { %s731_s10 = sshll.u32 (%p1396_p2), %s1397_s20, 4 }
 0x19d   : > { %s537_s7 = scalar_lea.vmem (%p1396_p2), %s1398_s27, %s731_s10 }
 0x19e   : > { %551 = vst [vmem:[%s537_s7] sm:$0xff] %v550_v52  ;;  %553 = vst [vmem:[%s537_s7 + $0x8] sm:$0xff] %v552_v53 }
 0x19f   : > { %555 = vst [vmem:[%s537_s7 + $0x20] sm:$0xff] %v554_v54  ;;  %557 = vst [vmem:[%s537_s7 + $0x28] sm:$0xff] %v556_v55 }
 0x1a0 PF: > { %s19_s24 = sadd.s32 1, %s1036_s24   ;;  %s1400_s19 = sld [smem:[#allocation17_spill]] }
 0x1a1   : > { %p1323_p5 = scmp.ge.s32.totalorder %s19_s24, 6   ;;  %s1401_s5 = sld [smem:[#allocation16_spill]] }
 0x1a2   : > { %s1402_s18 = sld [smem:[#allocation11_spill]]  ;;  %s1403_s9 = sld [smem:[#allocation15_spill]] }
 0x1a3   : > { %s1404_s1 = sld [smem:[#allocation13_spill]]  ;;  %s1405_s28 = sld [smem:[#allocation14_spill]] }
 0x1a4   : > { %s1406_s12 = smov %s992_s13  ;;  %s1407_s13 = smov %s996_s14 }
 0x1a5   : > { %s1409_s15 = smov %s1004_s16  ;;  %s1410_s16 = smov %s1008_s17 }
 0x1a6   : > { %s1408_s14 = smov %s1400_s19  ;;  %s1413_s20 = smov %s1028_s22 }
 0x1a7   : > { %s1411_s17 = smov %s1401_s5  ;;  %s1414_s21 = smov %s1032_s23 }
 0x1a8   : > { %s1412_s19 = smov %s1403_s9  ;;  %18 = sbr.rel (!%p1323_p5) target bundleno = 14 (0xe), region = 165 }
 0x1a9   : > { %s1415_s22 = smov %s1404_s1  ;;  %s1416_s23 = smov %s1405_s28 }
 0x1af   :  { %573 = vsyncpa [#allocation5], 1 }
 0x1b0   :  { %575 = vsyncpa [#allocation5 + $0x1], 1 }
 0x1b1   :  { %576 = vsyncpa [#allocation7], 1 }
 0x1b2   :  { %578 = vsyncpa [#allocation7 + $0x1], 1 }

</bundles_post_ra>
